<compile_context>
chip_gen: v7x
topology: tpu7x:2x2x1
jax: 0.10.0
libtpu: 0.0.40
codegen_flags: <defaults>
</compile_context>

<pallas_src>
import functools
import math

import jax
import jax.numpy as jnp
from jax.experimental import pallas as pl
from jax.experimental.pallas import tpu as pltpu

# ---- static config (stand-ins for `constants` / `TRAIN_CONFIG`) ----
INPUT_SIZE = 8
HIDDEN_SIZE = 32
NUM_LAYERS = 2
NUM_HEADS = 4
HEAD_DIM = HIDDEN_SIZE // NUM_HEADS
OUTPUT_SIZE = 4
BATCH = 2
SEQ = 8


# ------------------------------------------------------------------
# Fused kernel: wavefronted 2-layer LSTM -> attention (last query) -> fc
# ------------------------------------------------------------------
def _fused_kernel(x_ref, w_static_ref, w_rec_ref, w_vkq_ref, aux_ref, w_final_ref,
                  out_ref, *, B, T):
    f32 = jnp.float32
    bf16 = jnp.bfloat16
    H = w_rec_ref.shape[0] // 2
    TB = T * B

    w_rec = w_rec_ref[...]        # (2H, 8H) bf16, VMEM-resident across the recurrence
    # TODO(synk): explicit pltpu.matmul_push_rhs/acc_lhs RHS residency skipped for
    # robustness; w_rec is the identical RHS every step so the compiler can stage it.

    # Hoisted static pre-activations for every (layer, step):
    #   layer-1 columns: x_t @ Wih0^T + (b_ih0 + b_hh0)   (bias via ones column of x_aug)
    #   layer-2 columns: (b_ih1 + b_hh1)
    # Row block s is wavefront step s (time-major -> contiguous 2-sublane slice).
    static = jnp.dot(x_ref[...].astype(bf16), w_static_ref[...],
                     preferred_element_type=f32)                      # ((T+1)*B, 8H)

    # Wavefront state: h12 = [h1[s-1] | h2[s-2]], c12 likewise.
    h12 = jnp.zeros((B, 2 * H), f32)
    c12 = jnp.zeros((B, 2 * H), f32)
    layer1_only = jnp.concatenate([jnp.ones((B, H), f32),
                                   jnp.zeros((B, H), f32)], axis=1)

    h_hist = []
    for s in range(T + 1):        # statically unrolled, T+1 wavefront steps
        pre = static[s * B:(s + 1) * B, :]                            # (B, 8H)
        if s > 0:
            # ONE MXU op per step covers both layers' recurrent/input projections.
            pre = pre + jnp.dot(h12.astype(bf16), w_rec,
                                preferred_element_type=f32)
        # gate layout [i1 i2 | f1 f2 | o1 o2 | g1 g2]:
        sig = jax.nn.sigmoid(pre[:, 0:6 * H])                         # i/f/o, both layers
        g12 = jnp.tanh(pre[:, 6 * H:8 * H])                           # g, both layers
        i12 = sig[:, 0:2 * H]
        f12 = sig[:, 2 * H:4 * H]
        o12 = sig[:, 4 * H:6 * H]
        c12 = f12 * c12 + i12 * g12                                   # [c1[s] | c2[s-1]]
        h12 = o12 * jnp.tanh(c12)                                     # [h1[s] | h2[s-1]]
        if s == 0:
            # layer-2's real t=0 step runs at s=1; discard its dummy s=0 update
            h12 = h12 * layer1_only
            c12 = c12 * layer1_only
        else:
            h_hist.append(h12)    # right half is h2[s-1]

    # Time-major hidden history, no stack->reshape relayout; layer-1 lanes are
    # zeroed out by the zero top rows of w_vkq.
    h_all = jnp.concatenate(h_hist, axis=0)                           # (T*B, 2H)

    # ---- multi-head self-attention, last query position only (fully 2-D) ----
    vkq = jnp.dot(h_all.astype(bf16), w_vkq_ref[...],
                  preferred_element_type=f32)                         # (T*B, 3H)
    v = vkq[:, 0:H]                                                   # (T*B, H)
    k = vkq[:, H:2 * H]                                               # (T*B, H)
    q_last = vkq[(T - 1) * B:TB, 2 * H:3 * H]                         # (B, H), pre-scaled

    aux = aux_ref[...]
    g_sel = aux[0:H, :]                     # (H, H)   same-head lane mask
    r_sel = aux[H:H + B, 0:TB]              # (B, T*B) time-reduction selector
    p_sel = aux[H + B:H + B + TB, 0:B]      # (T*B, B) time-broadcast selector

    q_t = jnp.dot(p_sel, q_last, preferred_element_type=f32)          # (T*B, H)
    scores = jnp.dot(k * q_t, g_sel, preferred_element_type=f32)      # (T*B, H), head-replicated
    m = jnp.max(scores, axis=0, keepdims=True)                        # per-column shift (softmax-invariant)
    p = jnp.exp(scores - m)                                           # (T*B, H)
    denom = jnp.dot(r_sel, p, preferred_element_type=f32)             # (B, H)
    o_num = jnp.dot(r_sel, p * v, preferred_element_type=f32)         # (B, H)
    o = o_num * pl.reciprocal(denom, approx=True)                     # (B, H), heads concat

    # fc_out and final fc folded into one (H, O) matmul at prepare time
    wf = w_final_ref[...]                                             # (H+1, O)
    out_ref[...] = jnp.dot(o, wf[0:H, :],
                           preferred_element_type=f32) + wf[H:H + 1, :]
    # TODO(synk): SelfAttention `mask` (masked_fill) path not implemented; forward uses mask=None.


def lstm_attention_pallas(x, params):
    """Single gridless pallas_call: wavefronted 2-layer LSTM + attention + folded FC."""
    w_static, w_rec, w_vkq, aux, w_final = params
    B, T, I = x.shape
    # Time-major augmented input (host side, once per call): rows t*B+b; the
    # trailing ones column drives the fused biases; one extra bias-only row block
    # feeds the final (layer-2-only) wavefront step.
    x_tm = jnp.transpose(x, (1, 0, 2)).reshape(T * B, I)
    x_aug = jnp.concatenate([x_tm, jnp.ones((T * B, 1), jnp.float32)], axis=1)
    tail = jnp.concatenate([jnp.zeros((B, I), jnp.float32),
                            jnp.ones((B, 1), jnp.float32)], axis=1)
    x_aug = jnp.concatenate([x_aug, tail], axis=0)                    # ((T+1)*B, I+1)

    vmem = pl.BlockSpec(memory_space=pltpu.MemorySpace.VMEM)
    # TODO(synk): if B/T grow, grid over batch with dimension_semantics=("parallel",)
    # so v7x's second TensorCore gets work; at B=2/T=8 one fused block is optimal.
    return pl.pallas_call(
        functools.partial(_fused_kernel, B=B, T=T),
        out_shape=jax.ShapeDtypeStruct((B, OUTPUT_SIZE), jnp.float32),
        in_specs=[vmem] * 6,
        out_specs=vmem,
    )(x_aug, w_static, w_rec, w_vkq, aux, w_final)


# ------------------------------------------------------------------
# One-time parameter preparation (host side: all transposes, gate-column
# permutation, bias folding, block-diag packing, scale folding, fc folding)
# ------------------------------------------------------------------
def prepare_params(lstm_params, attn_params, fc_params):
    assert NUM_LAYERS == 2
    H = HIDDEN_SIZE
    (wih0, whh0, bih0, bhh0), (wih1, whh1, bih1, bhh1) = lstm_params

    def scatter(m, layer):
        """(rows, 4H) in PyTorch [i f g o] order -> (rows, 8H) fused
        [i1 i2 | f1 f2 | o1 o2 | g1 g2] layout for the given layer."""
        out = jnp.zeros((m.shape[0], 8 * H), jnp.float32)
        for dst, src in enumerate((0, 1, 3, 2)):       # fused gate blocks i, f, o, g
            col = dst * 2 * H + layer * H
            out = out.at[:, col:col + H].set(m[:, src * H:(src + 1) * H])
        return out

    # static blob: x @ Wih0^T plus BOTH layers' biases via the ones column of x_aug
    w_static = jnp.concatenate(
        [scatter(wih0.T, 0),
         scatter((bih0 + bhh0)[None, :], 0) + scatter((bih1 + bhh1)[None, :], 1)],
        axis=0).astype(jnp.bfloat16)                                  # (I+1, 8H)

    # fused per-step recurrent RHS: [h1 | h2] @ [[Whh0^T | Wih1^T], [0 | Whh1^T]]
    w_rec = jnp.concatenate(
        [scatter(whh0.T, 0) + scatter(wih1.T, 1),
         scatter(whh1.T, 1)],
        axis=0).astype(jnp.bfloat16)                                  # (2H, 8H)

    # block-diagonal per-head V|K|Q with 1/sqrt(H) folded into Q; zero top rows so
    # it consumes the (T*B, 2H) = [h1-lanes | h2-lanes] history directly.
    wv, wk, wq, wfc, bfc = attn_params
    eye = jnp.eye(NUM_HEADS, dtype=jnp.float32)
    scale = 1.0 / math.sqrt(float(H))
    vkq = jnp.concatenate([jnp.kron(eye, wv.T),
                           jnp.kron(eye, wk.T),
                           jnp.kron(eye, wq.T) * scale], axis=1)      # (H, 3H)
    w_vkq = jnp.concatenate([jnp.zeros((H, 3 * H), jnp.float32), vkq],
                            axis=0).astype(jnp.bfloat16)              # (2H, 3H)

    # selector blob: same-head mask G, time-reduce R, time-broadcast P (0/1 consts)
    TB = SEQ * BATCH
    g_sel = jnp.kron(eye, jnp.ones((HEAD_DIM, HEAD_DIM), jnp.float32))        # (H, H)
    b_of_row = jnp.arange(TB, dtype=jnp.int32) % BATCH
    r_sel = (b_of_row[None, :] == jnp.arange(BATCH, dtype=jnp.int32)[:, None]
             ).astype(jnp.float32)                                            # (B, TB)
    r_pad = jnp.zeros((BATCH, H), jnp.float32).at[:, :TB].set(r_sel)
    p_pad = jnp.zeros((TB, H), jnp.float32).at[:, :BATCH].set(r_sel.T)
    aux = jnp.concatenate([g_sel, r_pad, p_pad], axis=0)                      # (H+B+TB, H)

    # attention fc_out and the final fc are back-to-back Linears -> fold into one
    w_out, b_out = fc_params
    w_final = wfc.T @ w_out.T                                                 # (H, O)
    b_final = (bfc @ w_out.T + b_out)[None, :]                                # (1, O)
    w_final_blob = jnp.concatenate([w_final, b_final], axis=0)                # (H+1, O)

    return w_static, w_rec, w_vkq, aux, w_final_blob


# ------------------------------------------------------------------
# Parameter init (deterministic, synthetic, PyTorch layout)
# ------------------------------------------------------------------
def init_params(key):
    keys = jax.random.split(key, 15)
    ki = iter(range(15))

    def rnd(shape):
        return jax.random.normal(keys[next(ki)], shape, jnp.float32) * 0.1

    lstm = []
    in_sz = INPUT_SIZE
    for _ in range(NUM_LAYERS):
        w_ih = rnd((4 * HIDDEN_SIZE, in_sz))
        w_hh = rnd((4 * HIDDEN_SIZE, HIDDEN_SIZE))
        b_ih = rnd((4 * HIDDEN_SIZE,))
        b_hh = rnd((4 * HIDDEN_SIZE,))
        lstm.append((w_ih, w_hh, b_ih, b_hh))
        in_sz = HIDDEN_SIZE

    wv = rnd((HEAD_DIM, HEAD_DIM))
    wk = rnd((HEAD_DIM, HEAD_DIM))
    wq = rnd((HEAD_DIM, HEAD_DIM))
    wfc = rnd((HIDDEN_SIZE, HIDDEN_SIZE))
    bfc = rnd((HIDDEN_SIZE,))
    w_out = rnd((OUTPUT_SIZE, HIDDEN_SIZE))
    b_out = rnd((OUTPUT_SIZE,))
    return lstm, (wv, wk, wq, wfc, bfc), (w_out, b_out)


# ------------------------------------------------------------------
# Pure-JAX reference (mirrors the PyTorch forward, f32 throughout)
# ------------------------------------------------------------------
def ref_forward(x, lstm_params, attn_params, fc_params):
    h_in = x
    H = HIDDEN_SIZE
    for (w_ih, w_hh, b_ih, b_hh) in lstm_params:
        B, T, _ = h_in.shape
        h = jnp.zeros((B, H), jnp.float32)
        c = jnp.zeros((B, H), jnp.float32)
        outs = []
        for t in range(T):
            gates = h_in[:, t, :] @ w_ih.T + h @ w_hh.T + b_ih + b_hh
            i = jax.nn.sigmoid(gates[:, :H])
            f = jax.nn.sigmoid(gates[:, H:2 * H])
            g = jnp.tanh(gates[:, 2 * H:3 * H])
            o = jax.nn.sigmoid(gates[:, 3 * H:])
            c = f * c + i * g
            h = o * jnp.tanh(c)
            outs.append(h)
        h_in = jnp.stack(outs, axis=1)
    lstm_out = h_in

    wv, wk, wq, wfc, bfc = attn_params
    B, T, E = lstm_out.shape
    xh = lstm_out.reshape(B, T, NUM_HEADS, HEAD_DIM)
    v = xh @ wv.T
    k = xh @ wk.T
    q = xh @ wq.T
    att = jnp.einsum('nqhd,nkhd->nhqk', q, k) / math.sqrt(float(E))
    att = jax.nn.softmax(att, axis=3)
    o = jnp.einsum('nhql,nlhd->nqhd', att, v).reshape(B, T, E)
    attn_out = o @ wfc.T + bfc
    final = attn_out[:, -1, :]
    w_out, b_out = fc_params
    return final @ w_out.T + b_out


if __name__ == "__main__":
    key = jax.random.PRNGKey(0)
    k_x, k_p = jax.random.split(key)
    x = jax.random.normal(k_x, (BATCH, SEQ, INPUT_SIZE), jnp.float32)
    lstm_params, attn_params, fc_params = init_params(k_p)
    params = prepare_params(lstm_params, attn_params, fc_params)

    out = lstm_attention_pallas(x, params)
    out = jax.block_until_ready(out)

    ref = ref_forward(x, lstm_params, attn_params, fc_params)
    assert out.shape == (BATCH, OUTPUT_SIZE)
    # bf16 MXU operands (f32 accumulation) + approx EUP softmax reciprocal give
    # ~1e-3-level absolute error vs the f32 reference; tolerance set accordingly.
    assert jnp.allclose(out, ref, atol=1e-2, rtol=1e-2), (out, ref)

    print("KERNEL_OK")
</pallas_src>

<mosaic_0001>
module attributes {stable_mosaic.version = 11 : i64} {
  func.func @_fused_kernel(%arg0: memref<18x9xf32, #tpu.memory_space<vmem>>, %arg1: memref<9x256xbf16, #tpu.memory_space<vmem>>, %arg2: memref<64x256xbf16, #tpu.memory_space<vmem>>, %arg3: memref<64x96xbf16, #tpu.memory_space<vmem>>, %arg4: memref<50x32xf32, #tpu.memory_space<vmem>>, %arg5: memref<33x4xf32, #tpu.memory_space<vmem>>, %arg6: memref<2x4xf32, #tpu.memory_space<vmem>>) attributes {dimension_semantics = [], scalar_prefetch = 0 : i64, scratch_operands = 0 : i64, tpu.core_type = #tpu.core_type<tc>} {
    %c0 = arith.constant 0 : index
    %c0_0 = arith.constant 0 : index
    %0 = vector.load %arg2[%c0, %c0_0] : memref<64x256xbf16, #tpu.memory_space<vmem>>, vector<64x256xbf16>
    %c0_1 = arith.constant 0 : index
    %c0_2 = arith.constant 0 : index
    %1 = vector.load %arg0[%c0_1, %c0_2] : memref<18x9xf32, #tpu.memory_space<vmem>>, vector<18x9xf32>
    %2 = arith.truncf %1 : vector<18x9xf32> to vector<18x9xbf16>
    %c0_3 = arith.constant 0 : index
    %c0_4 = arith.constant 0 : index
    %3 = vector.load %arg1[%c0_3, %c0_4] : memref<9x256xbf16, #tpu.memory_space<vmem>>, vector<9x256xbf16>
    %cst = arith.constant dense<0.000000e+00> : vector<18x256xf32>
    %4 = tpu.matmul %2, %3, %cst {dimension_numbers = #tpu.dot_dimension_numbers<[1], [0], [0], [1], [0, 0, 1, 1], [], []>} : vector<18x9xbf16>, vector<9x256xbf16>, vector<18x256xf32> -> vector<18x256xf32>
    %cst_5 = arith.constant 0.000000e+00 : f32
    %5 = vector.broadcast %cst_5 : f32 to vector<2x64xf32>
    %cst_6 = arith.constant 1.000000e+00 : f32
    %6 = vector.broadcast %cst_6 : f32 to vector<2x32xf32>
    %cst_7 = arith.constant 0.000000e+00 : f32
    %7 = vector.broadcast %cst_7 : f32 to vector<2x32xf32>
    %8 = tpu.concatenate %6, %7 in 1 : vector<2x32xf32>, vector<2x32xf32> -> vector<2x64xf32>
    %9 = vector.extract_strided_slice %4 {offsets = [0, 0], sizes = [2, 256], strides = [1, 1]} : vector<18x256xf32> to vector<2x256xf32>
    %10 = vector.extract_strided_slice %9 {offsets = [0, 0], sizes = [2, 192], strides = [1, 1]} : vector<2x256xf32> to vector<2x192xf32>
    %11 = arith.negf %10 : vector<2x192xf32>
    %12 = math.exp %11 : vector<2x192xf32>
    %cst_8 = arith.constant 1.000000e+00 : f32
    %13 = vector.broadcast %cst_8 : f32 to vector<2x192xf32>
    %14 = arith.addf %13, %12 : vector<2x192xf32>
    %15 = arith.divf %13, %14 : vector<2x192xf32>
    %16 = vector.extract_strided_slice %9 {offsets = [0, 192], sizes = [2, 64], strides = [1, 1]} : vector<2x256xf32> to vector<2x64xf32>
    %17 = math.tanh %16 : vector<2x64xf32>
    %18 = vector.extract_strided_slice %15 {offsets = [0, 0], sizes = [2, 64], strides = [1, 1]} : vector<2x192xf32> to vector<2x64xf32>
    %19 = vector.extract_strided_slice %15 {offsets = [0, 64], sizes = [2, 64], strides = [1, 1]} : vector<2x192xf32> to vector<2x64xf32>
    %20 = vector.extract_strided_slice %15 {offsets = [0, 128], sizes = [2, 64], strides = [1, 1]} : vector<2x192xf32> to vector<2x64xf32>
    %21 = arith.mulf %19, %5 : vector<2x64xf32>
    %22 = arith.mulf %18, %17 : vector<2x64xf32>
    %23 = arith.addf %21, %22 : vector<2x64xf32>
    %24 = math.tanh %23 : vector<2x64xf32>
    %25 = arith.mulf %20, %24 : vector<2x64xf32>
    %26 = arith.mulf %25, %8 : vector<2x64xf32>
    %27 = arith.mulf %23, %8 : vector<2x64xf32>
    %28 = vector.extract_strided_slice %4 {offsets = [2, 0], sizes = [2, 256], strides = [1, 1]} : vector<18x256xf32> to vector<2x256xf32>
    %29 = arith.truncf %26 : vector<2x64xf32> to vector<2x64xbf16>
    %cst_9 = arith.constant dense<0.000000e+00> : vector<2x256xf32>
    %30 = tpu.matmul %29, %0, %cst_9 {dimension_numbers = #tpu.dot_dimension_numbers<[1], [0], [0], [1], [0, 0, 1, 1], [], []>} : vector<2x64xbf16>, vector<64x256xbf16>, vector<2x256xf32> -> vector<2x256xf32>
    %31 = arith.addf %28, %30 : vector<2x256xf32>
    %32 = vector.extract_strided_slice %31 {offsets = [0, 0], sizes = [2, 192], strides = [1, 1]} : vector<2x256xf32> to vector<2x192xf32>
    %33 = arith.negf %32 : vector<2x192xf32>
    %34 = math.exp %33 : vector<2x192xf32>
    %cst_10 = arith.constant 1.000000e+00 : f32
    %35 = vector.broadcast %cst_10 : f32 to vector<2x192xf32>
    %36 = arith.addf %35, %34 : vector<2x192xf32>
    %37 = arith.divf %35, %36 : vector<2x192xf32>
    %38 = vector.extract_strided_slice %31 {offsets = [0, 192], sizes = [2, 64], strides = [1, 1]} : vector<2x256xf32> to vector<2x64xf32>
    %39 = math.tanh %38 : vector<2x64xf32>
    %40 = vector.extract_strided_slice %37 {offsets = [0, 0], sizes = [2, 64], strides = [1, 1]} : vector<2x192xf32> to vector<2x64xf32>
    %41 = vector.extract_strided_slice %37 {offsets = [0, 64], sizes = [2, 64], strides = [1, 1]} : vector<2x192xf32> to vector<2x64xf32>
    %42 = vector.extract_strided_slice %37 {offsets = [0, 128], sizes = [2, 64], strides = [1, 1]} : vector<2x192xf32> to vector<2x64xf32>
    %43 = arith.mulf %41, %27 : vector<2x64xf32>
    %44 = arith.mulf %40, %39 : vector<2x64xf32>
    %45 = arith.addf %43, %44 : vector<2x64xf32>
    %46 = math.tanh %45 : vector<2x64xf32>
    %47 = arith.mulf %42, %46 : vector<2x64xf32>
    %48 = vector.extract_strided_slice %4 {offsets = [4, 0], sizes = [2, 256], strides = [1, 1]} : vector<18x256xf32> to vector<2x256xf32>
    %49 = arith.truncf %47 : vector<2x64xf32> to vector<2x64xbf16>
    %cst_11 = arith.constant dense<0.000000e+00> : vector<2x256xf32>
    %50 = tpu.matmul %49, %0, %cst_11 {dimension_numbers = #tpu.dot_dimension_numbers<[1], [0], [0], [1], [0, 0, 1, 1], [], []>} : vector<2x64xbf16>, vector<64x256xbf16>, vector<2x256xf32> -> vector<2x256xf32>
    %51 = arith.addf %48, %50 : vector<2x256xf32>
    %52 = vector.extract_strided_slice %51 {offsets = [0, 0], sizes = [2, 192], strides = [1, 1]} : vector<2x256xf32> to vector<2x192xf32>
    %53 = arith.negf %52 : vector<2x192xf32>
    %54 = math.exp %53 : vector<2x192xf32>
    %cst_12 = arith.constant 1.000000e+00 : f32
    %55 = vector.broadcast %cst_12 : f32 to vector<2x192xf32>
    %56 = arith.addf %55, %54 : vector<2x192xf32>
    %57 = arith.divf %55, %56 : vector<2x192xf32>
    %58 = vector.extract_strided_slice %51 {offsets = [0, 192], sizes = [2, 64], strides = [1, 1]} : vector<2x256xf32> to vector<2x64xf32>
    %59 = math.tanh %58 : vector<2x64xf32>
    %60 = vector.extract_strided_slice %57 {offsets = [0, 0], sizes = [2, 64], strides = [1, 1]} : vector<2x192xf32> to vector<2x64xf32>
    %61 = vector.extract_strided_slice %57 {offsets = [0, 64], sizes = [2, 64], strides = [1, 1]} : vector<2x192xf32> to vector<2x64xf32>
    %62 = vector.extract_strided_slice %57 {offsets = [0, 128], sizes = [2, 64], strides = [1, 1]} : vector<2x192xf32> to vector<2x64xf32>
    %63 = arith.mulf %61, %45 : vector<2x64xf32>
    %64 = arith.mulf %60, %59 : vector<2x64xf32>
    %65 = arith.addf %63, %64 : vector<2x64xf32>
    %66 = math.tanh %65 : vector<2x64xf32>
    %67 = arith.mulf %62, %66 : vector<2x64xf32>
    %68 = vector.extract_strided_slice %4 {offsets = [6, 0], sizes = [2, 256], strides = [1, 1]} : vector<18x256xf32> to vector<2x256xf32>
    %69 = arith.truncf %67 : vector<2x64xf32> to vector<2x64xbf16>
    %cst_13 = arith.constant dense<0.000000e+00> : vector<2x256xf32>
    %70 = tpu.matmul %69, %0, %cst_13 {dimension_numbers = #tpu.dot_dimension_numbers<[1], [0], [0], [1], [0, 0, 1, 1], [], []>} : vector<2x64xbf16>, vector<64x256xbf16>, vector<2x256xf32> -> vector<2x256xf32>
    %71 = arith.addf %68, %70 : vector<2x256xf32>
    %72 = vector.extract_strided_slice %71 {offsets = [0, 0], sizes = [2, 192], strides = [1, 1]} : vector<2x256xf32> to vector<2x192xf32>
    %73 = arith.negf %72 : vector<2x192xf32>
    %74 = math.exp %73 : vector<2x192xf32>
    %cst_14 = arith.constant 1.000000e+00 : f32
    %75 = vector.broadcast %cst_14 : f32 to vector<2x192xf32>
    %76 = arith.addf %75, %74 : vector<2x192xf32>
    %77 = arith.divf %75, %76 : vector<2x192xf32>
    %78 = vector.extract_strided_slice %71 {offsets = [0, 192], sizes = [2, 64], strides = [1, 1]} : vector<2x256xf32> to vector<2x64xf32>
    %79 = math.tanh %78 : vector<2x64xf32>
    %80 = vector.extract_strided_slice %77 {offsets = [0, 0], sizes = [2, 64], strides = [1, 1]} : vector<2x192xf32> to vector<2x64xf32>
    %81 = vector.extract_strided_slice %77 {offsets = [0, 64], sizes = [2, 64], strides = [1, 1]} : vector<2x192xf32> to vector<2x64xf32>
    %82 = vector.extract_strided_slice %77 {offsets = [0, 128], sizes = [2, 64], strides = [1, 1]} : vector<2x192xf32> to vector<2x64xf32>
    %83 = arith.mulf %81, %65 : vector<2x64xf32>
    %84 = arith.mulf %80, %79 : vector<2x64xf32>
    %85 = arith.addf %83, %84 : vector<2x64xf32>
    %86 = math.tanh %85 : vector<2x64xf32>
    %87 = arith.mulf %82, %86 : vector<2x64xf32>
    %88 = vector.extract_strided_slice %4 {offsets = [8, 0], sizes = [2, 256], strides = [1, 1]} : vector<18x256xf32> to vector<2x256xf32>
    %89 = arith.truncf %87 : vector<2x64xf32> to vector<2x64xbf16>
    %cst_15 = arith.constant dense<0.000000e+00> : vector<2x256xf32>
    %90 = tpu.matmul %89, %0, %cst_15 {dimension_numbers = #tpu.dot_dimension_numbers<[1], [0], [0], [1], [0, 0, 1, 1], [], []>} : vector<2x64xbf16>, vector<64x256xbf16>, vector<2x256xf32> -> vector<2x256xf32>
    %91 = arith.addf %88, %90 : vector<2x256xf32>
    %92 = vector.extract_strided_slice %91 {offsets = [0, 0], sizes = [2, 192], strides = [1, 1]} : vector<2x256xf32> to vector<2x192xf32>
    %93 = arith.negf %92 : vector<2x192xf32>
    %94 = math.exp %93 : vector<2x192xf32>
    %cst_16 = arith.constant 1.000000e+00 : f32
    %95 = vector.broadcast %cst_16 : f32 to vector<2x192xf32>
    %96 = arith.addf %95, %94 : vector<2x192xf32>
    %97 = arith.divf %95, %96 : vector<2x192xf32>
    %98 = vector.extract_strided_slice %91 {offsets = [0, 192], sizes = [2, 64], strides = [1, 1]} : vector<2x256xf32> to vector<2x64xf32>
    %99 = math.tanh %98 : vector<2x64xf32>
    %100 = vector.extract_strided_slice %97 {offsets = [0, 0], sizes = [2, 64], strides = [1, 1]} : vector<2x192xf32> to vector<2x64xf32>
    %101 = vector.extract_strided_slice %97 {offsets = [0, 64], sizes = [2, 64], strides = [1, 1]} : vector<2x192xf32> to vector<2x64xf32>
    %102 = vector.extract_strided_slice %97 {offsets = [0, 128], sizes = [2, 64], strides = [1, 1]} : vector<2x192xf32> to vector<2x64xf32>
    %103 = arith.mulf %101, %85 : vector<2x64xf32>
    %104 = arith.mulf %100, %99 : vector<2x64xf32>
    %105 = arith.addf %103, %104 : vector<2x64xf32>
    %106 = math.tanh %105 : vector<2x64xf32>
    %107 = arith.mulf %102, %106 : vector<2x64xf32>
    %108 = vector.extract_strided_slice %4 {offsets = [10, 0], sizes = [2, 256], strides = [1, 1]} : vector<18x256xf32> to vector<2x256xf32>
    %109 = arith.truncf %107 : vector<2x64xf32> to vector<2x64xbf16>
    %cst_17 = arith.constant dense<0.000000e+00> : vector<2x256xf32>
    %110 = tpu.matmul %109, %0, %cst_17 {dimension_numbers = #tpu.dot_dimension_numbers<[1], [0], [0], [1], [0, 0, 1, 1], [], []>} : vector<2x64xbf16>, vector<64x256xbf16>, vector<2x256xf32> -> vector<2x256xf32>
    %111 = arith.addf %108, %110 : vector<2x256xf32>
    %112 = vector.extract_strided_slice %111 {offsets = [0, 0], sizes = [2, 192], strides = [1, 1]} : vector<2x256xf32> to vector<2x192xf32>
    %113 = arith.negf %112 : vector<2x192xf32>
    %114 = math.exp %113 : vector<2x192xf32>
    %cst_18 = arith.constant 1.000000e+00 : f32
    %115 = vector.broadcast %cst_18 : f32 to vector<2x192xf32>
    %116 = arith.addf %115, %114 : vector<2x192xf32>
    %117 = arith.divf %115, %116 : vector<2x192xf32>
    %118 = vector.extract_strided_slice %111 {offsets = [0, 192], sizes = [2, 64], strides = [1, 1]} : vector<2x256xf32> to vector<2x64xf32>
    %119 = math.tanh %118 : vector<2x64xf32>
    %120 = vector.extract_strided_slice %117 {offsets = [0, 0], sizes = [2, 64], strides = [1, 1]} : vector<2x192xf32> to vector<2x64xf32>
    %121 = vector.extract_strided_slice %117 {offsets = [0, 64], sizes = [2, 64], strides = [1, 1]} : vector<2x192xf32> to vector<2x64xf32>
    %122 = vector.extract_strided_slice %117 {offsets = [0, 128], sizes = [2, 64], strides = [1, 1]} : vector<2x192xf32> to vector<2x64xf32>
    %123 = arith.mulf %121, %105 : vector<2x64xf32>
    %124 = arith.mulf %120, %119 : vector<2x64xf32>
    %125 = arith.addf %123, %124 : vector<2x64xf32>
    %126 = math.tanh %125 : vector<2x64xf32>
    %127 = arith.mulf %122, %126 : vector<2x64xf32>
    %128 = vector.extract_strided_slice %4 {offsets = [12, 0], sizes = [2, 256], strides = [1, 1]} : vector<18x256xf32> to vector<2x256xf32>
    %129 = arith.truncf %127 : vector<2x64xf32> to vector<2x64xbf16>
    %cst_19 = arith.constant dense<0.000000e+00> : vector<2x256xf32>
    %130 = tpu.matmul %129, %0, %cst_19 {dimension_numbers = #tpu.dot_dimension_numbers<[1], [0], [0], [1], [0, 0, 1, 1], [], []>} : vector<2x64xbf16>, vector<64x256xbf16>, vector<2x256xf32> -> vector<2x256xf32>
    %131 = arith.addf %128, %130 : vector<2x256xf32>
    %132 = vector.extract_strided_slice %131 {offsets = [0, 0], sizes = [2, 192], strides = [1, 1]} : vector<2x256xf32> to vector<2x192xf32>
    %133 = arith.negf %132 : vector<2x192xf32>
    %134 = math.exp %133 : vector<2x192xf32>
    %cst_20 = arith.constant 1.000000e+00 : f32
    %135 = vector.broadcast %cst_20 : f32 to vector<2x192xf32>
    %136 = arith.addf %135, %134 : vector<2x192xf32>
    %137 = arith.divf %135, %136 : vector<2x192xf32>
    %138 = vector.extract_strided_slice %131 {offsets = [0, 192], sizes = [2, 64], strides = [1, 1]} : vector<2x256xf32> to vector<2x64xf32>
    %139 = math.tanh %138 : vector<2x64xf32>
    %140 = vector.extract_strided_slice %137 {offsets = [0, 0], sizes = [2, 64], strides = [1, 1]} : vector<2x192xf32> to vector<2x64xf32>
    %141 = vector.extract_strided_slice %137 {offsets = [0, 64], sizes = [2, 64], strides = [1, 1]} : vector<2x192xf32> to vector<2x64xf32>
    %142 = vector.extract_strided_slice %137 {offsets = [0, 128], sizes = [2, 64], strides = [1, 1]} : vector<2x192xf32> to vector<2x64xf32>
    %143 = arith.mulf %141, %125 : vector<2x64xf32>
    %144 = arith.mulf %140, %139 : vector<2x64xf32>
    %145 = arith.addf %143, %144 : vector<2x64xf32>
    %146 = math.tanh %145 : vector<2x64xf32>
    %147 = arith.mulf %142, %146 : vector<2x64xf32>
    %148 = vector.extract_strided_slice %4 {offsets = [14, 0], sizes = [2, 256], strides = [1, 1]} : vector<18x256xf32> to vector<2x256xf32>
    %149 = arith.truncf %147 : vector<2x64xf32> to vector<2x64xbf16>
    %cst_21 = arith.constant dense<0.000000e+00> : vector<2x256xf32>
    %150 = tpu.matmul %149, %0, %cst_21 {dimension_numbers = #tpu.dot_dimension_numbers<[1], [0], [0], [1], [0, 0, 1, 1], [], []>} : vector<2x64xbf16>, vector<64x256xbf16>, vector<2x256xf32> -> vector<2x256xf32>
    %151 = arith.addf %148, %150 : vector<2x256xf32>
    %152 = vector.extract_strided_slice %151 {offsets = [0, 0], sizes = [2, 192], strides = [1, 1]} : vector<2x256xf32> to vector<2x192xf32>
    %153 = arith.negf %152 : vector<2x192xf32>
    %154 = math.exp %153 : vector<2x192xf32>
    %cst_22 = arith.constant 1.000000e+00 : f32
    %155 = vector.broadcast %cst_22 : f32 to vector<2x192xf32>
    %156 = arith.addf %155, %154 : vector<2x192xf32>
    %157 = arith.divf %155, %156 : vector<2x192xf32>
    %158 = vector.extract_strided_slice %151 {offsets = [0, 192], sizes = [2, 64], strides = [1, 1]} : vector<2x256xf32> to vector<2x64xf32>
    %159 = math.tanh %158 : vector<2x64xf32>
    %160 = vector.extract_strided_slice %157 {offsets = [0, 0], sizes = [2, 64], strides = [1, 1]} : vector<2x192xf32> to vector<2x64xf32>
    %161 = vector.extract_strided_slice %157 {offsets = [0, 64], sizes = [2, 64], strides = [1, 1]} : vector<2x192xf32> to vector<2x64xf32>
    %162 = vector.extract_strided_slice %157 {offsets = [0, 128], sizes = [2, 64], strides = [1, 1]} : vector<2x192xf32> to vector<2x64xf32>
    %163 = arith.mulf %161, %145 : vector<2x64xf32>
    %164 = arith.mulf %160, %159 : vector<2x64xf32>
    %165 = arith.addf %163, %164 : vector<2x64xf32>
    %166 = math.tanh %165 : vector<2x64xf32>
    %167 = arith.mulf %162, %166 : vector<2x64xf32>
    %168 = vector.extract_strided_slice %4 {offsets = [16, 0], sizes = [2, 256], strides = [1, 1]} : vector<18x256xf32> to vector<2x256xf32>
    %169 = arith.truncf %167 : vector<2x64xf32> to vector<2x64xbf16>
    %cst_23 = arith.constant dense<0.000000e+00> : vector<2x256xf32>
    %170 = tpu.matmul %169, %0, %cst_23 {dimension_numbers = #tpu.dot_dimension_numbers<[1], [0], [0], [1], [0, 0, 1, 1], [], []>} : vector<2x64xbf16>, vector<64x256xbf16>, vector<2x256xf32> -> vector<2x256xf32>
    %171 = arith.addf %168, %170 : vector<2x256xf32>
    %172 = vector.extract_strided_slice %171 {offsets = [0, 0], sizes = [2, 192], strides = [1, 1]} : vector<2x256xf32> to vector<2x192xf32>
    %173 = arith.negf %172 : vector<2x192xf32>
    %174 = math.exp %173 : vector<2x192xf32>
    %cst_24 = arith.constant 1.000000e+00 : f32
    %175 = vector.broadcast %cst_24 : f32 to vector<2x192xf32>
    %176 = arith.addf %175, %174 : vector<2x192xf32>
    %177 = arith.divf %175, %176 : vector<2x192xf32>
    %178 = vector.extract_strided_slice %171 {offsets = [0, 192], sizes = [2, 64], strides = [1, 1]} : vector<2x256xf32> to vector<2x64xf32>
    %179 = math.tanh %178 : vector<2x64xf32>
    %180 = vector.extract_strided_slice %177 {offsets = [0, 0], sizes = [2, 64], strides = [1, 1]} : vector<2x192xf32> to vector<2x64xf32>
    %181 = vector.extract_strided_slice %177 {offsets = [0, 64], sizes = [2, 64], strides = [1, 1]} : vector<2x192xf32> to vector<2x64xf32>
    %182 = vector.extract_strided_slice %177 {offsets = [0, 128], sizes = [2, 64], strides = [1, 1]} : vector<2x192xf32> to vector<2x64xf32>
    %183 = arith.mulf %181, %165 : vector<2x64xf32>
    %184 = arith.mulf %180, %179 : vector<2x64xf32>
    %185 = arith.addf %183, %184 : vector<2x64xf32>
    %186 = math.tanh %185 : vector<2x64xf32>
    %187 = arith.mulf %182, %186 : vector<2x64xf32>
    %188 = tpu.concatenate %47, %67, %87, %107, %127, %147, %167, %187 in 0 : vector<2x64xf32>, vector<2x64xf32>, vector<2x64xf32>, vector<2x64xf32>, vector<2x64xf32>, vector<2x64xf32>, vector<2x64xf32>, vector<2x64xf32> -> vector<16x64xf32>
    %189 = arith.truncf %188 : vector<16x64xf32> to vector<16x64xbf16>
    %c0_25 = arith.constant 0 : index
    %c0_26 = arith.constant 0 : index
    %190 = vector.load %arg3[%c0_25, %c0_26] : memref<64x96xbf16, #tpu.memory_space<vmem>>, vector<64x96xbf16>
    %cst_27 = arith.constant dense<0.000000e+00> : vector<16x96xf32>
    %191 = tpu.matmul %189, %190, %cst_27 {dimension_numbers = #tpu.dot_dimension_numbers<[1], [0], [0], [1], [0, 0, 1, 1], [], []>} : vector<16x64xbf16>, vector<64x96xbf16>, vector<16x96xf32> -> vector<16x96xf32>
    %192 = vector.extract_strided_slice %191 {offsets = [0, 0], sizes = [16, 32], strides = [1, 1]} : vector<16x96xf32> to vector<16x32xf32>
    %193 = vector.extract_strided_slice %191 {offsets = [0, 32], sizes = [16, 32], strides = [1, 1]} : vector<16x96xf32> to vector<16x32xf32>
    %194 = vector.extract_strided_slice %191 {offsets = [14, 64], sizes = [2, 32], strides = [1, 1]} : vector<16x96xf32> to vector<2x32xf32>
    %c0_28 = arith.constant 0 : index
    %c0_29 = arith.constant 0 : index
    %195 = vector.load %arg4[%c0_28, %c0_29] : memref<50x32xf32, #tpu.memory_space<vmem>>, vector<50x32xf32>
    %196 = vector.extract_strided_slice %195 {offsets = [0, 0], sizes = [32, 32], strides = [1, 1]} : vector<50x32xf32> to vector<32x32xf32>
    %197 = vector.extract_strided_slice %195 {offsets = [32, 0], sizes = [2, 16], strides = [1, 1]} : vector<50x32xf32> to vector<2x16xf32>
    %198 = vector.extract_strided_slice %195 {offsets = [34, 0], sizes = [16, 2], strides = [1, 1]} : vector<50x32xf32> to vector<16x2xf32>
    %cst_30 = arith.constant dense<0.000000e+00> : vector<16x32xf32>
    %199 = tpu.matmul %198, %194, %cst_30 {dimension_numbers = #tpu.dot_dimension_numbers<[1], [0], [0], [1], [0, 0, 1, 1], [], []>} : vector<16x2xf32>, vector<2x32xf32>, vector<16x32xf32> -> vector<16x32xf32>
    %200 = arith.mulf %193, %199 : vector<16x32xf32>
    %cst_31 = arith.constant dense<0.000000e+00> : vector<16x32xf32>
    %201 = tpu.matmul %200, %196, %cst_31 {dimension_numbers = #tpu.dot_dimension_numbers<[1], [0], [0], [1], [0, 0, 1, 1], [], []>} : vector<16x32xf32>, vector<32x32xf32>, vector<16x32xf32> -> vector<16x32xf32>
    %cst_32 = arith.constant dense<0xFF800000> : vector<32xf32>
    %202 = vector.multi_reduction <maximumf>, %201, %cst_32 [0] : vector<16x32xf32> to vector<32xf32>
    %203 = vector.shape_cast %202 : vector<32xf32> to vector<1x32xf32>
    %204 = vector.broadcast %203 : vector<1x32xf32> to vector<16x32xf32>
    %205 = arith.subf %201, %204 : vector<16x32xf32>
    %206 = math.exp %205 : vector<16x32xf32>
    %cst_33 = arith.constant dense<0.000000e+00> : vector<2x32xf32>
    %207 = tpu.matmul %197, %206, %cst_33 {dimension_numbers = #tpu.dot_dimension_numbers<[1], [0], [0], [1], [0, 0, 1, 1], [], []>} : vector<2x16xf32>, vector<16x32xf32>, vector<2x32xf32> -> vector<2x32xf32>
    %208 = arith.mulf %206, %192 : vector<16x32xf32>
    %cst_34 = arith.constant dense<0.000000e+00> : vector<2x32xf32>
    %209 = tpu.matmul %197, %208, %cst_34 {dimension_numbers = #tpu.dot_dimension_numbers<[1], [0], [0], [1], [0, 0, 1, 1], [], []>} : vector<2x16xf32>, vector<16x32xf32>, vector<2x32xf32> -> vector<2x32xf32>
    %210 = tpu.reciprocal %207 {approx = true} : vector<2x32xf32> -> vector<2x32xf32>
    %211 = arith.mulf %209, %210 : vector<2x32xf32>
    %c0_35 = arith.constant 0 : index
    %c0_36 = arith.constant 0 : index
    %212 = vector.load %arg5[%c0_35, %c0_36] : memref<33x4xf32, #tpu.memory_space<vmem>>, vector<33x4xf32>
    %213 = vector.extract_strided_slice %212 {offsets = [0, 0], sizes = [32, 4], strides = [1, 1]} : vector<33x4xf32> to vector<32x4xf32>
    %cst_37 = arith.constant dense<0.000000e+00> : vector<2x4xf32>
    %214 = tpu.matmul %211, %213, %cst_37 {dimension_numbers = #tpu.dot_dimension_numbers<[1], [0], [0], [1], [0, 0, 1, 1], [], []>} : vector<2x32xf32>, vector<32x4xf32>, vector<2x4xf32> -> vector<2x4xf32>
    %215 = vector.extract_strided_slice %212 {offsets = [32, 0], sizes = [1, 4], strides = [1, 1]} : vector<33x4xf32> to vector<1x4xf32>
    %216 = vector.broadcast %215 : vector<1x4xf32> to vector<2x4xf32>
    %217 = arith.addf %214, %216 : vector<2x4xf32>
    %c0_38 = arith.constant 0 : index
    %c0_39 = arith.constant 0 : index
    %218 = vector.load %arg6[%c0_38, %c0_39] : memref<2x4xf32, #tpu.memory_space<vmem>>, vector<2x4xf32>
    tpu.vector_store %arg6[%c0_38, %c0_39], %217 {strides = array<i32>} : memref<2x4xf32, #tpu.memory_space<vmem>>, vector<2x4xf32>,
    return
  }
}

</mosaic_0001>

<bundles_post_ra>
// kernel: tpu_custom_call.1
= control target key start
LH: loop header
LB: loop body
LE: loop exit
PB: predicated region body
PF: predicated region fallthrough
CT: control target
= control target key end

     0   :  { %vm55_vm0 = vcmask 1043456   ;;  %vm56_vm1 = vcmask 1044480   ;;  %v1766_v2 = vmov 65535   ;;  %v1767_v7 = vmov 0   ;;  %s2108_s0 = inlined_call_operand.vmem [shape: f32[18,9], index: 0, kind: input, shape index: {}]   ;;  %s2109_s1 = inlined_call_operand.vmem [shape: bf16[9,256], index: 1, kind: input, shape index: {}]   ;;  %s2110_s2 = inlined_call_operand.vmem [shape: bf16[64,256], index: 2, kind: input, shape index: {}]   ;;  %s2111_s3 = inlined_call_operand.vmem [shape: bf16[64,96], index: 3, kind: input, shape index: {}]   ;;  %s2112_s4 = inlined_call_operand.vmem [shape: f32[50,32], index: 4, kind: input, shape index: {}]   ;;  %s2113_s5 = inlined_call_operand.vmem [shape: f32[33,4], index: 5, kind: input, shape index: {}]   ;;  %s2114_s6 = inlined_call_operand.hbm [shape: f32[2,4], index: 6, kind: output, shape index: {}]  }
   0x1   :  { %v1609_v0 = vld [vmem:[%s2109_s1 + $0x4] ss:$8 sps:$4 sm:$0x1f]   ;;  %v1611_v1 = vld [vmem:[%s2109_s1] ss:$8 sps:$4 sm:$0x1f]   ;;  %97 = vmatprep.mubr.bf16.mxu1 %v1767_v7  ;;  %319 = vmatprep.mubr.bf16.mxu0 %v1767_v7 }
   0x2   :  { %v57_v3 = vsel %vm55_vm0, 4294967295, %v1766_v2  ;;  %v33_v4 = vld [vmem:[%s2108_s0] sm:$0xff]  ;;  %v34_v5 = vld [vmem:[%s2108_s0 + $0x8] sm:$0xff]  ;;  %vm48_vm2 = vcmask 72704  }
   0x3   :  { %v58_v6 = vsel %vm56_vm1, %v57_v3, 0  ;;  %v36_v10 = vpack.c.bf16 %v34_v5, %v33_v4 }
   0x4   :  { %v63_v8 = vand.u32 %v1609_v0, %v58_v6  ;;  %v60_v9 = vand.u32 %v1611_v1, %v58_v6 }
   0x6   :  { %65 = vmatprep.subr.bf16.mxu1 %v63_v8 }
   0x7   :  { %66 = vmatpush1.bf16.msra.mxu1 %v60_v9 }
   0x8   :  { %11 = vsyncpa [#allocation3], 0  ;;  %s1768_s1 = smov 64   ;;  %vm116_vm3 = vcmask 261120   ;;  %v1842_v22 = vld [vmem:[%s2110_s2 + $0x4] ss:$8 sps:$4 sm:$0xff]  }
   0x9   :  { %v1847_v23 = vld [vmem:[%s2110_s2] ss:$8 sps:$4 sm:$0xff]   ;;  %v1852_v24 = vld [vmem:[%s2110_s2 + $0x14] ss:$8 sps:$4 sm:$0xff]   ;;  %v1769_v25 = vmov 0.0   ;;  %199 = vmatprep.subr.bf16.mxu1 %v1842_v22  ;;  %287 = vmatprep.subr.bf16.mxu0 %v1842_v22  ;;  %vm195_vm4 = vcmask 523264  }
   0xa   :  { %1450 = vmatmul.mubr.msk.bf16.vlgmr.msra.gmra.mrb[0].mxu1 %vm48_vm2, %v36_v10  ;;  %v117_v26 = vsel %vm116_vm3, 1.0, %v1769_v25  ;;  %v35_v27 = vld [vmem:[%s2108_s0 + $0x10] sm:$0x3]  ;;  %288 = vmatpush1.bf16.msra.mxu0 %v1847_v23  ;;  %v1873_v30 = vld [vmem:[%s2110_s2 + $0x24] ss:$8 sps:$4 sm:$0xff]   ;;  %vm907_vm5 = vcmask 1041408  }
   0xb   :  { %107 = vmatprep.mubr.bf16.mxu1 %v1767_v7  ;;  %v37_v28 = vpack.c.bf16 %v35_v27, %v35_v27  ;;  %200 = vmatpush1.bf16.msra.mxu1 %v1847_v23  ;;  %v1865_v29 = vld [vmem:[%s2110_s2 + $0x10] ss:$8 sps:$4 sm:$0xff]   ;;  %v1885_v31 = vld [vmem:[%s2110_s2 + $0x20] ss:$8 sps:$4 sm:$0xff]   ;;  %v1892_v35 = vld [vmem:[%s2110_s2 + $0x34] ss:$8 sps:$4 sm:$0xff]  }
   0xc   :  { %201 = vmatprep.subr.bf16.mxu1 %v1852_v24  ;;  %289 = vmatprep.subr.bf16.mxu0 %v1852_v24  ;;  %v1897_v36 = vld [vmem:[%s2110_s2 + $0x30] ss:$8 sps:$4 sm:$0xff]   ;;  %vm910_vm6 = vcmask 1045504   ;;  %vm1770_vm7 = vmmov 0   ;;  %vm1011_vm8 = vcmask 15360   ;;  %s1771_s16 = smov 32  }
   0xd   :  { %s1772_s17 = smov 96   ;;  %vm1203_vm9 = vcmask 130048   ;;  %s1774_s26 = smov [#allocation2]   ;;  %vm1432_vm10 = vcmask 25600  }
   0xe   :  { %290 = vmatpush1.bf16.msra.mxu0 %v1865_v29  ;;  %s1440_s27 = sshll.u32 %s1774_s26, 4  ;;  %s1441_s27 = int_to_ptr.vmem [resolvable:$true] %s1440_s27 }
   0xf   :  { %202 = vmatpush1.bf16.msra.mxu1 %v1865_v29  ;;  %291 = vmatprep.subr.bf16.mxu0 %v1873_v30  ;;  %s1742_s28 = scalar_lea.vmem %s1441_s27, 32  ;;  %p1747_p1 = scmp.lt.s32.totalorder %s1441_s27, %s1441_s27 }
  0x10   :  { %203 = vmatprep.subr.bf16.mxu1 %v1873_v30  ;;  %p1743_p0 = scmp.ne.s32.totalorder %s1441_s27, %s1742_s28  ;;  %p1748_p2 = scmp.lt.s32.totalorder %s1742_s28, %s1742_s28 }
  0x12   :  { %1451 = vmatmul.mubr.msk.bf16.gmra.mrb[4].mxu1 %vm48_vm2, %v37_v28  ;;  %292 = vmatpush1.bf16.msra.mxu0 %v1885_v31  ;;  %p1749_p3 = por %p1748_p2, %p1747_p1 }
  0x13   :  { %231 = vmatprep.mubr.bf16.mxu1 %v1767_v7  ;;  %204 = vmatpush1.bf16.msra.mxu1 %v1885_v31 }
  0x14   :  { %205 = vmatprep.subr.bf16.mxu1 %v1892_v35  ;;  %293 = vmatprep.subr.bf16.mxu0 %v1892_v35  ;;  %p1750_p4 = pnand %p1749_p3, %p1743_p0 }
  0x16   :  { %294 = vmatpush1.bf16.msra.mxu0 %v1897_v36 }
  0x17   :  { %206 = vmatpush1.bf16.msra.mxu1 %v1897_v36  ;;  %463 = vmatprep.subr.bf16.mxu0 %v1842_v22 }
  0x18   :  { %375 = vmatprep.subr.bf16.mxu1 %v1842_v22 }
  0xdd   :  { %v1827_v11 = vpop.f32.mrb[0].mxu1 }
  0xde   :  { %v1829_v12 = vpop.f32.mrb[1].mxu1  ;;  %v1452_v16 = vmul.f32 -1.442695, %v1827_v11 }
  0xdf   :  { %1628 = vtanh.f32 %v1829_v12  ;;  %v1832_v13 = vpop.f32.mrb[2].mxu1  ;;  %v1453_v38 = vmul.f32 -1.442695, %v1829_v12 }
  0xe0   :  { %v1834_v14 = vpop.f32.mrb[3].mxu1  ;;  %1630 = vpow2.f32 %v1452_v16 }
  0xe5   :  { %v1907_v39 = vpop.f32.mrb[4].mxu1 }
  0xe6   :  { %v1909_v40 = vpop.f32.mrb[5].mxu1 }
  0xe7   :  { %v113_v41 = vpop.f32.mrb[6].mxu1 }
  0xe8   :  { %v114_v42 = vpop.f32.mrb[7].mxu1 }
  0xe9   :  { %v1629_v15 = vpop.eup %1628 }
  0xea   :  { %133 = vrot.lane.b32.xlu0 %v1629_v15, %s1768_s1  ;;  %v1631_v17 = vpop.eup %1630 }
  0xeb   :  { %v124_v18 = vadd.f32 1.0, %v1631_v17 }
  0xed   :  { %1632 = vrcp.f32 %v124_v18 }
  0xf7   :  { %v1633_v19 = vpop.eup %1632 }
  0xf8   :  { %v131_v32 = vmul.f32 0.0, %v1633_v19 }
 0x15c   :  { %v134_v20 = vpop.permute.xlu0 %133 }
 0x15d   :  { %v136_v21 = vmul.f32 %v1633_v19, %v134_v20 }
 0x15f   :  { %138 = vrot.lane.b32.xlu0 %v136_v21, %s1768_s1 }
 0x163   :  { %150 = vrot.lane.b32.xlu0 %v117_v26, %s1768_s1 }
 0x1d1   :  { %v139_v33 = vpop.permute.xlu0 %138 }
 0x1d2   :  { %v141_v34 = vadd.f32 %v139_v33, %v131_v32 }
 0x1d4   :  { %1634 = vtanh.f32 %v141_v34 }
 0x1d5   :  { %1636 = vpow2.f32 %v1453_v38  ;;  %v151_v1 = vpop.permute.xlu0 %150 }
 0x1d6   :  { %v153_v2 = vmul.f32 %v151_v1, %v141_v34 }
 0x1d8   :  { %v262_v3 = vrot.slane %v153_v2, 6 }
 0x1de   :  { %v1635_v37 = vpop.eup %1634 }
 0x1df   :  { %144 = vrot.lane.b32.xlu1 %v1635_v37, %s1768_s1  ;;  %v1637_v43 = vpop.eup %1636 }
 0x1e0   :  { %v125_v44 = vadd.f32 1.0, %v1637_v43 }
 0x1e2   :  { %1638 = vrcp.f32 %v125_v44 }
 0x1ec   :  { %v1639_v45 = vpop.eup %1638 }
 0x251   :  { %v145_v46 = vpop.permute.xlu1 %144 }
 0x252   :  { %v147_v47 = vmul.f32 %v1639_v45, %v145_v46 }
 0x254   :  { %v148_v48 = vmul.f32 %v147_v47, %v117_v26 }
 0x256   :  { %v154_v49 = vpack.c.bf16 %v148_v48, %v148_v48 }
 0x258   :  { %1462 = vmatmul.mubr.msk.bf16.vlgmr.msra.gmra.mrb[8].mxu1 %vm195_vm4, %v154_v49 }
 0x259   :  { %376 = vmatpush1.bf16.msra.mxu1 %v1847_v23  ;;  %407 = vmatprep.mubr.bf16.mxu1 %v1767_v7 }
 0x25a   :  { %377 = vmatprep.subr.bf16.mxu1 %v1852_v24 }
 0x25d   :  { %378 = vmatpush1.bf16.msra.mxu1 %v1865_v29 }
 0x25e   :  { %379 = vmatprep.subr.bf16.mxu1 %v1873_v30 }
 0x261   :  { %380 = vmatpush1.bf16.msra.mxu1 %v1885_v31 }
 0x262   :  { %381 = vmatprep.subr.bf16.mxu1 %v1892_v35 }
 0x265   :  { %382 = vmatpush1.bf16.msra.mxu1 %v1897_v36 }
 0x266   :  { %543 = vmatprep.subr.bf16.mxu1 %v1842_v22 }
 0x32b   :  { %v233_v50 = vpop.f32.mrb[8].mxu1 }
 0x32c   :  { %v242_v51 = vrot.slane %v233_v50, 6  ;;  %v235_v52 = vpop.f32.mrb[9].mxu1 }
 0x32d   :  { %v243_v53 = vrot.slane %v235_v52, 6  ;;  %v237_v54 = vpop.f32.mrb[10].mxu1 }
 0x32e   :  { %v246_v55 = vadd.f32 %v242_v51, %v1827_v11  ;;  %v238_v56 = vpop.f32.mrb[11].mxu1 }
 0x32f   :  { %v247_v57 = vadd.f32 %v243_v53, %v1829_v12 }
 0x330   :  { %v1463_v59 = vmul.f32 -1.442695, %v246_v55 }
 0x331   :  { %1640 = vtanh.f32 %v247_v57  ;;  %v1464_v9 = vmul.f32 -1.442695, %v247_v57 }
 0x332   :  { %1642 = vpow2.f32 %v1463_v59 }
 0x33b   :  { %v1641_v58 = vpop.eup %1640 }
 0x33c   :  { %266 = vrot.lane.b32.xlu1 %v1641_v58, %s1768_s1  ;;  %v1643_v60 = vpop.eup %1642 }
 0x33d   :  { %v254_v61 = vadd.f32 1.0, %v1643_v60 }
 0x33f   :  { %1644 = vrcp.f32 %v254_v61 }
 0x349   :  { %v1645_v62 = vpop.eup %1644 }
 0x34a   :  { %v264_v4 = vmul.f32 %v1645_v62, %v262_v3 }
 0x3ae   :  { %v267_v63 = vpop.permute.xlu1 %266 }
 0x3af   :  { %v269_v0 = vmul.f32 %v1645_v62, %v267_v63 }
 0x3b1   :  { %271 = vrot.lane.b32.xlu1 %v269_v0, %s1768_s1 }
 0x423   :  { %v272_v5 = vpop.permute.xlu1 %271 }
 0x424   :  { %v274_v6 = vadd.f32 %v272_v5, %v264_v4 }
 0x426   :  { %1646 = vtanh.f32 %v274_v6  ;;  %v350_v47 = vrot.slane %v274_v6, 6 }
 0x427   :  { %1648 = vpow2.f32 %v1464_v9 }
 0x430   :  { %v1647_v8 = vpop.eup %1646 }
 0x431   :  { %277 = vrot.lane.b32.xlu0 %v1647_v8, %s1768_s1  ;;  %v1649_v10 = vpop.eup %1648 }
 0x432   :  { %v255_v15 = vadd.f32 1.0, %v1649_v10 }
 0x434   :  { %1650 = vrcp.f32 %v255_v15 }
 0x43e   :  { %v1651_v16 = vpop.eup %1650 }
 0x4a3   :  { %v278_v17 = vpop.permute.xlu0 %277 }
 0x4a4   :  { %v280_v18 = vmul.f32 %v1651_v16, %v278_v17 }
 0x4a6   :  { %v281_v19 = vpack.c.bf16 %v280_v18, %v280_v18  ;;  %v884_v58 = vrot.slane %v280_v18, 2 }
 0x4a8   :  { %v283_v20 = vrot.slane %v281_v19, 1 }
 0x4aa   :  { %1465 = vmatmul.mubr.msk.bf16.vlgmr.msra.gmra.mrb[0].mxu0 %vm195_vm4, %v283_v20 }
 0x4ab   :  { %464 = vmatpush1.bf16.msra.mxu0 %v1847_v23  ;;  %495 = vmatprep.mubr.bf16.mxu0 %v1767_v7 }
 0x4ac   :  { %465 = vmatprep.subr.bf16.mxu0 %v1852_v24 }
 0x4af   :  { %466 = vmatpush1.bf16.msra.mxu0 %v1865_v29 }
 0x4b0   :  { %467 = vmatprep.subr.bf16.mxu0 %v1873_v30 }
 0x4b3   :  { %468 = vmatpush1.bf16.msra.mxu0 %v1885_v31 }
 0x4b4   :  { %469 = vmatprep.subr.bf16.mxu0 %v1892_v35 }
 0x4b7   :  { %470 = vmatpush1.bf16.msra.mxu0 %v1897_v36 }
 0x4b8   :  { %631 = vmatprep.subr.bf16.mxu0 %v1842_v22 }
 0x57d   :  { %v321_v21 = vpop.f32.mrb[0].mxu0 }
 0x57e   :  { %v330_v26 = vrot.slane %v321_v21, 4  ;;  %v323_v27 = vpop.f32.mrb[1].mxu0 }
 0x57f   :  { %v331_v28 = vrot.slane %v323_v27, 4  ;;  %v325_v32 = vpop.f32.mrb[2].mxu0 }
 0x580   :  { %v334_v33 = vadd.f32 %v330_v26, %v1827_v11  ;;  %v326_v34 = vpop.f32.mrb[3].mxu0 }
 0x581   :  { %v335_v37 = vadd.f32 %v331_v28, %v1829_v12 }
 0x582   :  { %v1466_v41 = vmul.f32 -1.442695, %v334_v33 }
 0x583   :  { %1652 = vtanh.f32 %v335_v37  ;;  %v1467_v52 = vmul.f32 -1.442695, %v335_v37 }
 0x584   :  { %1654 = vpow2.f32 %v1466_v41 }
 0x58d   :  { %v1653_v38 = vpop.eup %1652 }
 0x58e   :  { %354 = vrot.lane.b32.xlu1 %v1653_v38, %s1768_s1  ;;  %v1655_v42 = vpop.eup %1654 }
 0x58f   :  { %v342_v43 = vadd.f32 1.0, %v1655_v42 }
 0x591   :  { %1656 = vrcp.f32 %v342_v43 }
 0x59b   :  { %v1657_v44 = vpop.eup %1656 }
 0x59c   :  { %v352_v48 = vmul.f32 %v1657_v44, %v350_v47 }
 0x600   :  { %v355_v45 = vpop.permute.xlu1 %354 }
 0x601   :  { %v357_v46 = vmul.f32 %v1657_v44, %v355_v45 }
 0x603   :  { %359 = vrot.lane.b32.xlu0 %v357_v46, %s1768_s1 }
 0x675   :  { %v360_v49 = vpop.permute.xlu0 %359 }
 0x676   :  { %v362_v50 = vadd.f32 %v360_v49, %v352_v48 }
 0x678   :  { %1658 = vtanh.f32 %v362_v50  ;;  %v438_v19 = vrot.slane %v362_v50, 6 }
 0x679   :  { %1660 = vpow2.f32 %v1467_v52 }
 0x682   :  { %v1659_v51 = vpop.eup %1658 }
 0x683   :  { %365 = vrot.lane.b32.xlu1 %v1659_v51, %s1768_s1  ;;  %v1661_v53 = vpop.eup %1660 }
 0x684   :  { %v343_v54 = vadd.f32 1.0, %v1661_v53 }
 0x686   :  { %1662 = vrcp.f32 %v343_v54 }
 0x690   :  { %v1663_v55 = vpop.eup %1662 }
 0x6f5   :  { %v366_v56 = vpop.permute.xlu1 %365 }
 0x6f6   :  { %v368_v57 = vmul.f32 %v1663_v55, %v366_v56 }
 0x6f8   :  { %v369_v59 = vpack.c.bf16 %v368_v57, %v368_v57  ;;  %v887_v60 = vrot.slane %v368_v57, 2 }
 0x6fa   :  { %v371_v61 = vrot.slane %v369_v59, 2  ;;  %v908_v62 = vsel %vm907_vm5, %v884_v58, %v887_v60 }
 0x6fc   :  { %1468 = vmatmul.mubr.msk.bf16.vlgmr.msra.gmra.mrb[12].mxu1 %vm195_vm4, %v371_v61 }
 0x6fd   :  { %544 = vmatpush1.bf16.msra.mxu1 %v1847_v23  ;;  %575 = vmatprep.mubr.bf16.mxu1 %v1767_v7 }
 0x6fe   :  { %545 = vmatprep.subr.bf16.mxu1 %v1852_v24 }
 0x701   :  { %546 = vmatpush1.bf16.msra.mxu1 %v1865_v29 }
 0x702   :  { %547 = vmatprep.subr.bf16.mxu1 %v1873_v30 }
 0x705   :  { %548 = vmatpush1.bf16.msra.mxu1 %v1885_v31 }
 0x706   :  { %549 = vmatprep.subr.bf16.mxu1 %v1892_v35 }
 0x709   :  { %550 = vmatpush1.bf16.msra.mxu1 %v1897_v36 }
 0x70a   :  { %719 = vmatprep.subr.bf16.mxu1 %v1842_v22 }
 0x7cf   :  { %v409_v63 = vpop.f32.mrb[12].mxu1 }
 0x7d0   :  { %v418_v0 = vrot.slane %v409_v63, 2  ;;  %v411_v1 = vpop.f32.mrb[13].mxu1 }
 0x7d1   :  { %v419_v2 = vrot.slane %v411_v1, 2  ;;  %v413_v3 = vpop.f32.mrb[14].mxu1 }
 0x7d2   :  { %v422_v4 = vadd.f32 %v418_v0, %v1827_v11  ;;  %v414_v5 = vpop.f32.mrb[15].mxu1 }
 0x7d3   :  { %v423_v6 = vadd.f32 %v419_v2, %v1829_v12 }
 0x7d4   :  { %v1469_v9 = vmul.f32 -1.442695, %v422_v4 }
 0x7d5   :  { %1664 = vtanh.f32 %v423_v6  ;;  %v1470_v26 = vmul.f32 -1.442695, %v423_v6 }
 0x7d6   :  { %1666 = vpow2.f32 %v1469_v9 }
 0x7df   :  { %v1665_v8 = vpop.eup %1664 }
 0x7e0   :  { %442 = vrot.lane.b32.xlu0 %v1665_v8, %s1768_s1  ;;  %v1667_v10 = vpop.eup %1666 }
 0x7e1   :  { %v430_v15 = vadd.f32 1.0, %v1667_v10 }
 0x7e3   :  { %1668 = vrcp.f32 %v430_v15 }
 0x7ed   :  { %v1669_v16 = vpop.eup %1668 }
 0x7ee   :  { %v440_v20 = vmul.f32 %v1669_v16, %v438_v19 }
 0x852   :  { %v443_v17 = vpop.permute.xlu0 %442 }
 0x853   :  { %v445_v18 = vmul.f32 %v1669_v16, %v443_v17 }
 0x855   :  { %447 = vrot.lane.b32.xlu1 %v445_v18, %s1768_s1 }
 0x8c7   :  { %v448_v11 = vpop.permute.xlu1 %447 }
 0x8c8   :  { %v450_v21 = vadd.f32 %v448_v11, %v440_v20 }
 0x8ca   :  { %1670 = vtanh.f32 %v450_v21  ;;  %v520_v55 = vrot.slane %v450_v21, 6 }
 0x8cb   :  { %1672 = vpow2.f32 %v1470_v26 }
 0x8d4   :  { %v1671_v12 = vpop.eup %1670 }
 0x8d5   :  { %453 = vrot.lane.b32.xlu0 %v1671_v12, %s1768_s1  ;;  %v1673_v27 = vpop.eup %1672 }
 0x8d6   :  { %v431_v28 = vadd.f32 1.0, %v1673_v27 }
 0x8d8   :  { %1674 = vrcp.f32 %v431_v28 }
 0x8e2   :  { %v1675_v32 = vpop.eup %1674 }
 0x947   :  { %v454_v33 = vpop.permute.xlu0 %453 }
 0x948   :  { %v456_v34 = vmul.f32 %v1675_v32, %v454_v33 }
 0x94a   :  { %v457_v37 = vpack.c.bf16 %v456_v34, %v456_v34  ;;  %v890_v38 = vrot.slane %v456_v34, 2 }
 0x94c   :  { %v459_v41 = vrot.slane %v457_v37, 3  ;;  %v909_v42 = vsel %vm55_vm0, %v908_v62, %v890_v38 }
 0x94e   :  { %1471 = vmatmul.mubr.msk.bf16.vlgmr.msra.gmra.mrb[4].mxu0 %vm195_vm4, %v459_v41 }
 0x94f   :  { %632 = vmatpush1.bf16.msra.mxu0 %v1847_v23  ;;  %663 = vmatprep.mubr.bf16.mxu0 %v1767_v7 }
 0x950   :  { %633 = vmatprep.subr.bf16.mxu0 %v1852_v24 }
 0x953   :  { %634 = vmatpush1.bf16.msra.mxu0 %v1865_v29 }
 0x954   :  { %635 = vmatprep.subr.bf16.mxu0 %v1873_v30 }
 0x957   :  { %636 = vmatpush1.bf16.msra.mxu0 %v1885_v31 }
 0x958   :  { %637 = vmatprep.subr.bf16.mxu0 %v1892_v35 }
 0x95b   :  { %638 = vmatpush1.bf16.msra.mxu0 %v1897_v36 }
 0x95c   :  { %807 = vmatprep.subr.bf16.mxu0 %v1842_v22 }
 0xa21   :  { %v497_v43 = vpop.f32.mrb[4].mxu0 }
 0xa22   :  { %v504_v44 = vadd.f32 %v497_v43, %v1832_v13  ;;  %v499_v45 = vpop.f32.mrb[5].mxu0 }
 0xa23   :  { %v505_v46 = vadd.f32 %v499_v45, %v1834_v14  ;;  %v501_v47 = vpop.f32.mrb[6].mxu0 }
 0xa24   :  { %v502_v48 = vpop.f32.mrb[7].mxu0  ;;  %v1472_v50 = vmul.f32 -1.442695, %v504_v44 }
 0xa25   :  { %1676 = vtanh.f32 %v505_v46  ;;  %v1473_v60 = vmul.f32 -1.442695, %v505_v46 }
 0xa26   :  { %1678 = vpow2.f32 %v1472_v50 }
 0xa2f   :  { %v1677_v49 = vpop.eup %1676 }
 0xa30   :  { %524 = vrot.lane.b32.xlu1 %v1677_v49, %s1768_s1  ;;  %v1679_v51 = vpop.eup %1678 }
 0xa31   :  { %v512_v52 = vadd.f32 1.0, %v1679_v51 }
 0xa33   :  { %1680 = vrcp.f32 %v512_v52 }
 0xa3d   :  { %v1681_v53 = vpop.eup %1680 }
 0xa3e   :  { %v522_v56 = vmul.f32 %v1681_v53, %v520_v55 }
 0xaa2   :  { %v525_v54 = vpop.permute.xlu1 %524 }
 0xaa3   :  { %v527_v22 = vmul.f32 %v1681_v53, %v525_v54 }
 0xaa5   :  { %529 = vrot.lane.b32.xlu0 %v527_v22, %s1768_s1 }
 0xb17   :  { %v530_v57 = vpop.permute.xlu0 %529 }
 0xb18   :  { %v532_v58 = vadd.f32 %v530_v57, %v522_v56 }
 0xb1a   :  { %1682 = vtanh.f32 %v532_v58  ;;  %v606_v27 = vrot.slane %v532_v58, 6 }
 0xb1b   :  { %1684 = vpow2.f32 %v1473_v60 }
 0xb24   :  { %v1683_v59 = vpop.eup %1682 }
 0xb25   :  { %535 = vrot.lane.b32.xlu1 %v1683_v59, %s1768_s1  ;;  %v1685_v61 = vpop.eup %1684 }
 0xb26   :  { %v513_v62 = vadd.f32 1.0, %v1685_v61 }
 0xb28   :  { %1686 = vrcp.f32 %v513_v62 }
 0xb32   :  { %v1687_v63 = vpop.eup %1686 }
 0xb97   :  { %v536_v0 = vpop.permute.xlu1 %535 }
 0xb98   :  { %v538_v1 = vmul.f32 %v1687_v63, %v536_v0 }
 0xb9a   :  { %v539_v2 = vpack.c.bf16 %v538_v1, %v538_v1  ;;  %v893_v3 = vrot.slane %v538_v1, 2 }
 0xb9c   :  { %v1974_v4 = vsel %vm910_vm6, %v909_v42, %v893_v3  ;;  %1474 = vmatmul.mubr.msk.bf16.vlgmr.msra.gmra.mrb[16].mxu1 %vm195_vm4, %v539_v2 }
 0xb9d   :  { %720 = vmatpush1.bf16.msra.mxu1 %v1847_v23  ;;  %751 = vmatprep.mubr.bf16.mxu1 %v1767_v7 }
 0xb9e   :  { %721 = vmatprep.subr.bf16.mxu1 %v1852_v24 }
 0xba1   :  { %722 = vmatpush1.bf16.msra.mxu1 %v1865_v29 }
 0xba2   :  { %723 = vmatprep.subr.bf16.mxu1 %v1873_v30 }
 0xba5   :  { %724 = vmatpush1.bf16.msra.mxu1 %v1885_v31 }
 0xba6   :  { %725 = vmatprep.subr.bf16.mxu1 %v1892_v35 }
 0xba9   :  { %726 = vmatpush1.bf16.msra.mxu1 %v1897_v36 }
 0xbaa   :  { %1525 = vmatprep.subr.bf16.mxu1 %v1769_v25 }
 0xc6f   :  { %v577_v5 = vpop.f32.mrb[16].mxu1 }
 0xc70   :  { %v586_v6 = vrot.slane %v577_v5, 6  ;;  %v579_v8 = vpop.f32.mrb[17].mxu1 }
 0xc71   :  { %v587_v9 = vrot.slane %v579_v8, 6  ;;  %v581_v10 = vpop.f32.mrb[18].mxu1 }
 0xc72   :  { %v590_v15 = vadd.f32 %v586_v6, %v1832_v13  ;;  %v582_v16 = vpop.f32.mrb[19].mxu1 }
 0xc73   :  { %v591_v17 = vadd.f32 %v587_v9, %v1834_v14 }
 0xc74   :  { %v1475_v19 = vmul.f32 -1.442695, %v590_v15 }
 0xc75   :  { %1688 = vtanh.f32 %v591_v17  ;;  %v1476_v37 = vmul.f32 -1.442695, %v591_v17 }
 0xc76   :  { %1690 = vpow2.f32 %v1475_v19 }
 0xc7f   :  { %v1689_v18 = vpop.eup %1688 }
 0xc80   :  { %610 = vrot.lane.b32.xlu0 %v1689_v18, %s1768_s1  ;;  %v1691_v20 = vpop.eup %1690 }
 0xc81   :  { %v598_v11 = vadd.f32 1.0, %v1691_v20 }
 0xc83   :  { %1692 = vrcp.f32 %v598_v11 }
 0xc8d   :  { %v1693_v21 = vpop.eup %1692 }
 0xc8e   :  { %v608_v28 = vmul.f32 %v1693_v21, %v606_v27 }
 0xcf2   :  { %v611_v12 = vpop.permute.xlu0 %610 }
 0xcf3   :  { %v613_v26 = vmul.f32 %v1693_v21, %v611_v12 }
 0xcf5   :  { %615 = vrot.lane.b32.xlu1 %v613_v26, %s1768_s1 }
 0xd67   :  { %v616_v32 = vpop.permute.xlu1 %615 }
 0xd68   :  { %v618_v33 = vadd.f32 %v616_v32, %v608_v28 }
 0xd6a   :  { %1694 = vtanh.f32 %v618_v33  ;;  %v694_v54 = vrot.slane %v618_v33, 6 }
 0xd6b   :  { %1696 = vpow2.f32 %v1476_v37 }
 0xd74   :  { %v1695_v34 = vpop.eup %1694 }
 0xd75   :  { %621 = vrot.lane.b32.xlu0 %v1695_v34, %s1768_s1  ;;  %v1697_v38 = vpop.eup %1696 }
 0xd76   :  { %v599_v41 = vadd.f32 1.0, %v1697_v38 }
 0xd78   :  { %1698 = vrcp.f32 %v599_v41 }
 0xd82   :  { %v1699_v42 = vpop.eup %1698 }
 0xde7   :  { %v622_v43 = vpop.permute.xlu0 %621 }
 0xde8   :  { %v624_v44 = vmul.f32 %v1699_v42, %v622_v43 }
 0xdea   :  { %v625_v45 = vpack.c.bf16 %v624_v44, %v624_v44  ;;  %v896_v0 = vrot.slane %v624_v44, 2 }
 0xdec   :  { %v627_v46 = vrot.slane %v625_v45, 1 }
 0xdee   :  { %1477 = vmatmul.mubr.msk.bf16.vlgmr.msra.gmra.mrb[8].mxu0 %vm195_vm4, %v627_v46 }
 0xdef   :  { %808 = vmatpush1.bf16.msra.mxu0 %v1847_v23  ;;  %839 = vmatprep.mubr.bf16.mxu0 %v1767_v7 }
 0xdf0   :  { %809 = vmatprep.subr.bf16.mxu0 %v1852_v24 }
 0xdf3   :  { %810 = vmatpush1.bf16.msra.mxu0 %v1865_v29 }
 0xdf4   :  { %811 = vmatprep.subr.bf16.mxu0 %v1873_v30 }
 0xdf7   :  { %812 = vmatpush1.bf16.msra.mxu0 %v1885_v31 }
 0xdf8   :  { %813 = vmatprep.subr.bf16.mxu0 %v1892_v35 }
 0xdfb   :  { %814 = vmatpush1.bf16.msra.mxu0 %v1897_v36 }
 0xec1   :  { %v665_v47 = vpop.f32.mrb[8].mxu0 }
 0xec2   :  { %v674_v48 = vrot.slane %v665_v47, 4  ;;  %v667_v49 = vpop.f32.mrb[9].mxu0 }
 0xec3   :  { %v675_v50 = vrot.slane %v667_v49, 4  ;;  %v669_v51 = vpop.f32.mrb[10].mxu0 }
 0xec4   :  { %v678_v23 = vadd.f32 %v674_v48, %v1832_v13  ;;  %v670_v7 = vpop.f32.mrb[11].mxu0 }
 0xec5   :  { %v679_v24 = vadd.f32 %v675_v50, %v1834_v14 }
 0xec6   :  { %v1478_v30 = vmul.f32 -1.442695, %v678_v23 }
 0xec7   :  { %1700 = vtanh.f32 %v679_v24  ;;  %v1479_v58 = vmul.f32 -1.442695, %v679_v24 }
 0xec8   :  { %1702 = vpow2.f32 %v1478_v30 }
 0xed1   :  { %v1701_v29 = vpop.eup %1700 }
 0xed2   :  { %698 = vrot.lane.b32.xlu1 %v1701_v29, %s1768_s1  ;;  %v1703_v31 = vpop.eup %1702 }
 0xed3   :  { %v686_v35 = vadd.f32 1.0, %v1703_v31 }
 0xed5   :  { %1704 = vrcp.f32 %v686_v35 }
 0xedf   :  { %v1705_v36 = vpop.eup %1704 }
 0xee0   :  { %v696_v22 = vmul.f32 %v1705_v36, %v694_v54 }
 0xf44   :  { %v699_v52 = vpop.permute.xlu1 %698 }
 0xf45   :  { %v701_v53 = vmul.f32 %v1705_v36, %v699_v52 }
 0xf47   :  { %703 = vrot.lane.b32.xlu0 %v701_v53, %s1768_s1 }
 0xfb9   :  { %v704_v55 = vpop.permute.xlu0 %703 }
 0xfba   :  { %v706_v56 = vadd.f32 %v704_v55, %v696_v22  ;;  %v1626_v22 = vld [vmem:[%s2111_s3 + $0x10] sm:$0xff]  }
 0xfbc   :  { %1706 = vtanh.f32 %v706_v56  ;;  %v782_v28 = vrot.slane %v706_v56, 6 }
 0xfbd   :  { %1708 = vpow2.f32 %v1479_v58 }
 0xfc6   :  { %v1707_v57 = vpop.eup %1706 }
 0xfc7   :  { %709 = vrot.lane.b32.xlu1 %v1707_v57, %s1768_s1  ;;  %v1709_v59 = vpop.eup %1708  ;;  %v1627_v57 = vld [vmem:[%s2111_s3 + $0x18] sm:$0xff]  }
 0xfc8   :  { %v687_v60 = vadd.f32 1.0, %v1709_v59 }
 0xfca   :  { %1710 = vrcp.f32 %v687_v60 }
 0xfd4   :  { %v1711_v61 = vpop.eup %1710 }
0x1039   :  { %v710_v62 = vpop.permute.xlu1 %709 }
0x103a   :  { %v712_v63 = vmul.f32 %v1711_v61, %v710_v62 }
0x103c   :  { %v713_v1 = vpack.c.bf16 %v712_v63, %v712_v63  ;;  %v899_v2 = vrot.slane %v712_v63, 2 }
0x103e   :  { %v715_v3 = vrot.slane %v713_v1, 2  ;;  %v912_v5 = vsel %vm907_vm5, %v896_v0, %v899_v2 }
0x1040   :  { %1480 = vmatmul.mubr.msk.bf16.vlgmr.msra.gmra.mrb[20].mxu1 %vm195_vm4, %v715_v3 }
0x1041   :  { %1533 = vmatprep.mubr.msk.bf16.mxu1 %vm1770_vm7, %v1769_v25 }
0x1113   :  { %v753_v6 = vpop.f32.mrb[20].mxu1 }
0x1114   :  { %v762_v8 = vrot.slane %v753_v6, 2  ;;  %v755_v9 = vpop.f32.mrb[21].mxu1  ;;  %v997_v6 = vld [vmem:[%s2112_s4 + $0x28] sm:$0xff] }
0x1115   :  { %v763_v10 = vrot.slane %v755_v9, 2  ;;  %v757_v15 = vpop.f32.mrb[22].mxu1  ;;  %v1003_v9 = vrot.slane %v997_v6, 2 }
0x1116   :  { %v766_v16 = vadd.f32 %v762_v8, %v1832_v13  ;;  %v758_v17 = vpop.f32.mrb[23].mxu1 }
0x1117   :  { %v767_v18 = vadd.f32 %v763_v10, %v1834_v14 }
0x1118   :  { %v1481_v20 = vmul.f32 -1.442695, %v766_v16 }
0x1119   :  { %1712 = vtanh.f32 %v767_v18  ;;  %v1482_v34 = vmul.f32 -1.442695, %v767_v18 }
0x111a   :  { %1714 = vpow2.f32 %v1481_v20 }
0x1123   :  { %v1713_v19 = vpop.eup %1712 }
0x1124   :  { %786 = vrot.lane.b32.xlu0 %v1713_v19, %s1768_s1  ;;  %v1715_v11 = vpop.eup %1714  ;;  %v998_v19 = vld [vmem:[%s2112_s4 + $0x30] sm:$0x3] }
0x1125   :  { %v774_v21 = vadd.f32 1.0, %v1715_v11  ;;  %v1005_v20 = vrot.slane %v998_v19, 2 }
0x1127   :  { %1716 = vrcp.f32 %v774_v21  ;;  %v1006_v21 = vsel %vm910_vm6, %v1003_v9, %v1005_v20 }
0x1131   :  { %v1717_v12 = vpop.eup %1716 }
0x1132   :  { %v784_v32 = vmul.f32 %v1717_v12, %v782_v28 }
0x1196   :  { %v787_v26 = vpop.permute.xlu0 %786 }
0x1197   :  { %v789_v27 = vmul.f32 %v1717_v12, %v787_v26  ;;  %v992_v12 = vld [vmem:[%s2112_s4] sm:$0xff]  ;;  %v993_v26 = vld [vmem:[%s2112_s4 + $0x8] sm:$0xff] }
0x1198   :  { %v1578_v28 = vpack.c.bf16 %v993_v26, %v992_v12 }
0x1199   :  { %791 = vrot.lane.b32.xlu1 %v789_v27, %s1768_s1  ;;  %v994_v27 = vld [vmem:[%s2112_s4 + $0x10] sm:$0xff] }
0x120b   :  { %v792_v13 = vpop.permute.xlu1 %791 }
0x120c   :  { %v794_v33 = vadd.f32 %v792_v13, %v784_v32  ;;  %v995_v32 = vld [vmem:[%s2112_s4 + $0x18] sm:$0xff] }
0x120d   :  { %v1582_v13 = vpack.c.bf16 %v995_v32, %v994_v27 }
0x120e   :  { %1718 = vtanh.f32 %v794_v33  ;;  %v864_v53 = vrot.slane %v794_v33, 6 }
0x120f   :  { %1720 = vpow2.f32 %v1482_v34 }
0x1218   :  { %v1719_v14 = vpop.eup %1718 }
0x1219   :  { %797 = vrot.lane.b32.xlu0 %v1719_v14, %s1768_s1  ;;  %v1721_v37 = vpop.eup %1720 }
0x121a   :  { %v775_v38 = vadd.f32 1.0, %v1721_v37 }
0x121c   :  { %1722 = vrcp.f32 %v775_v38 }
0x1226   :  { %v1723_v41 = vpop.eup %1722 }
0x128b   :  { %v798_v42 = vpop.permute.xlu0 %797 }
0x128c   :  { %v800_v43 = vmul.f32 %v1723_v41, %v798_v42 }
0x128e   :  { %v801_v44 = vpack.c.bf16 %v800_v43, %v800_v43  ;;  %v902_v45 = vrot.slane %v800_v43, 2 }
0x1290   :  { %v803_v46 = vrot.slane %v801_v44, 3  ;;  %v913_v47 = vsel %vm55_vm0, %v912_v5, %v902_v45  ;;  %v2044_v5 = vld [vmem:[%s2112_s4 + $0x20] sm:$0xff]  ;;  %v1773_v44 = vmov 0.0|0.0  }
0x1291   :  { %v1002_v8 = vrot.slane %v2044_v5, 2 }
0x1292   :  { %1483 = vmatmul.mubr.msk.bf16.vlgmr.msra.gmra.mrb[12].mxu0 %vm195_vm4, %v803_v46 }
0x1293   :  { %v1004_v10 = vsel %vm910_vm6, %v1002_v8, %v1003_v9 }
0x1294   :  { %1539 = vmatprep.mubr.msk.f32.mxu0 %vm1011_vm8, %v1004_v10 }
0x1365   :  { %v841_v48 = vpop.f32.mrb[12].mxu0 }
0x1366   :  { %v848_v49 = vadd.f32 %v841_v48, %v1907_v39  ;;  %v843_v50 = vpop.f32.mrb[13].mxu0  ;;  %v1624_v39 = vld [vmem:[%s2111_s3] sm:$0xff]  }
0x1367   :  { %v849_v51 = vadd.f32 %v843_v50, %v1909_v40  ;;  %v845_v23 = vpop.f32.mrb[14].mxu0  ;;  %1526 = vmatpush3.bf16.msra.mxu1 %v1624_v39  ;;  %v1625_v40 = vld [vmem:[%s2111_s3 + $0x8] sm:$0xff]  }
0x1368   :  { %v846_v7 = vpop.f32.mrb[15].mxu0  ;;  %v1484_v29 = vmul.f32 -1.442695, %v848_v49  ;;  %1527 = vmatprep.subr.bf16.mxu1 %v1769_v25 }
0x1369   :  { %1724 = vtanh.f32 %v849_v51  ;;  %v1485_v59 = vmul.f32 -1.442695, %v849_v51 }
0x136a   :  { %1726 = vpow2.f32 %v1484_v29 }
0x136b   :  { %1528 = vmatpush3.bf16.msra.mxu1 %v1625_v40 }
0x136c   :  { %1529 = vmatprep.subr.bf16.mxu1 %v1769_v25 }
0x136f   :  { %1530 = vmatpush3.bf16.msra.mxu1 %v1626_v22 }
0x1370   :  { %1531 = vmatprep.subr.bf16.mxu1 %v1769_v25 }
0x1373   :  { %v1725_v24 = vpop.eup %1724  ;;  %1532 = vmatpush3.bf16.msra.mxu1 %v1627_v57 }
0x1374   :  { %868 = vrot.lane.b32.xlu1 %v1725_v24, %s1768_s1  ;;  %v1727_v30 = vpop.eup %1726  ;;  %1589 = vmatprep.subr.bf16.mxu1 %v1773_v44 }
0x1375   :  { %v856_v31 = vadd.f32 1.0, %v1727_v30 }
0x1377   :  { %1728 = vrcp.f32 %v856_v31 }
0x1381   :  { %v1729_v35 = vpop.eup %1728 }
0x1382   :  { %v866_v54 = vmul.f32 %v1729_v35, %v864_v53 }
0x13e6   :  { %v869_v36 = vpop.permute.xlu1 %868 }
0x13e7   :  { %v871_v52 = vmul.f32 %v1729_v35, %v869_v36 }
0x13e9   :  { %873 = vrot.lane.b32.xlu0 %v871_v52, %s1768_s1 }
0x145b   :  { %v874_v55 = vpop.permute.xlu0 %873 }
0x145c   :  { %v876_v56 = vadd.f32 %v874_v55, %v866_v54  ;;  %v1350_v55 = vld [vmem:[%s2113_s5] sm:$0xff] }
0x145e   :  { %1730 = vtanh.f32 %v876_v56  ;;  %v1351_v56 = vld [vmem:[%s2113_s5 + $0x8] sm:$0xff] }
0x145f   :  { %1732 = vpow2.f32 %v1485_v59  ;;  %v1593_v57 = vpack.c.bf16 %v1351_v56, %v1350_v55 }
0x1468   :  { %v1731_v58 = vpop.eup %1730 }
0x1469   :  { %879 = vrot.lane.b32.xlu1 %v1731_v58, %s1768_s1  ;;  %v1733_v60 = vpop.eup %1732  ;;  %v1352_v58 = vld [vmem:[%s2113_s5 + $0x10] sm:$0xff] }
0x146a   :  { %v857_v61 = vadd.f32 1.0, %v1733_v60 }
0x146c   :  { %1734 = vrcp.f32 %v857_v61 }
0x1476   :  { %v1735_v62 = vpop.eup %1734 }
0x14db   :  { %v880_v63 = vpop.permute.xlu1 %879 }
0x14dc   :  { %v882_v0 = vmul.f32 %v1735_v62, %v880_v63 }
0x14de   :  { %v905_v1 = vrot.slane %v882_v0, 2 }
0x14e0   :  { %v914_v2 = vsel %vm910_vm6, %v913_v47, %v905_v1 }
0x14e1   :  { %v915_v3 = vpack.c.bf16 %v914_v2, %v1974_v4  ;;  %v1498_v2 = vld [vmem:[%s2113_s5 + $0x20] ss:$0 sm:$0xff] }
0x14e3   :  { %1534 = vmatmul.mubr.msk.bf16.vlgmr.msra.gmra.mrb[24].mxu1 %vm195_vm4, %v915_v3 }
0x14e4   :  { %1564 = vmatprep.mubr.msk.f32.mxu1 %vm1770_vm7, %v1769_v25 }
0x15b6   :  { %v985_v4 = vpop.f32.mrb[24].mxu1 }
0x15b7   :  { %v1535_v15 = vpop.f32.mrb[25].mxu1 }
0x15b8   :  { %v988_v16 = vpop.f32.mrb[26].mxu1 }
0x15b9   :  { %v1008_v17 = vrot.slane %v988_v16, 6  ;;  %v1536_v18 = vpop.f32.mrb[27].mxu1 }
0x15bb   :  { %1009 = vrot.lane.b32.xlu0 %v1008_v17, %s1768_s1 }
0x162d   :  { %v1010_v11 = vpop.permute.xlu0 %1009 }
0x162e   :  { %1537 = vmatprep.subr.msk.mxu0 %vm907_vm5, %v1010_v11 }
0x162f   :  { %1538 = vmatpush3.msk.msra.mxu0 %vm907_vm5, %v1010_v11 }
0x1630   :  { %1540 = vmatmul.mubr.msk.f32.vlgmr.msra.gmra.mrb[16].mxu0 %vm1011_vm8, %v1006_v21  ;;  %1579 = vmatprep.subr.bf16.mxu0 %v1578_v28 }
0x1631   :  { %1581 = vmatpush3.bf16.msra.mxu0 %v1578_v28 }
0x1632   :  { %1583 = vmatprep.subr.bf16.mxu0 %v1582_v13 }
0x1635   :  { %1585 = vmatpush3.bf16.msra.mxu0 %v1582_v13 }
0x1636   :  { %1586 = vmatprep.subr.bf16.mxu0 %v1773_v44 }
0x1703   :  { %v1541_v33 = vpop.f32.mrb[16].mxu0 }
0x1704   :  { %1097 = vrot.lane.b32.xlu0 %v1541_v33, %s1771_s16  ;;  %v1084_v14 = vpop.f32.mrb[17].mxu0 }
0x1705   :  { %1095 = vrot.lane.b32.xlu1 %v1084_v14, %s1771_s16 }
0x1776   :  { %v1098_v34 = vpop.permute.xlu0 %1097 }
0x1777   :  { %v1102_v37 = vmul.f32 %v1098_v34, %v988_v16  ;;  %v1096_v38 = vpop.permute.xlu1 %1095 }
0x1778   :  { %v1101_v41 = vmul.f32 %v1096_v38, %v985_v4 }
0x1779   :  { %1107 = vrot.lane.b32.xlu0 %v1102_v37, %s1772_s17 }
0x177a   :  { %1105 = vrot.lane.b32.xlu1 %v1101_v41, %s1772_s17 }
0x17eb   :  { %v1108_v43 = vpop.permute.xlu0 %1107 }
0x17ec   :  { %v1106_v42 = vpop.permute.xlu1 %1105 }
0x17ed   :  { %1550 = vmatprep.mubr.msk.f32.mxu0 %vm116_vm3, %v1106_v42 }
0x17ee   :  { %1551 = vmatmul.mubr.msk.f32.vlgmr.msra.gmra.mrb[18].mxu0 %vm116_vm3, %v1108_v43 }
0x17ef   :  { %1557 = vmatprep.mubr.msk.f32.mxu0 %vm1770_vm7, %v1769_v25 }
0x18c1   :  { %v1552_v45 = vpop.f32.mrb[18].mxu0 }
0x18c2   :  { %v1189_v46 = vsel %vm116_vm3, %v1552_v45, -inf  ;;  %v1179_v47 = vpop.f32.mrb[19].mxu0 }
0x18c3   :  { %v1188_v48 = vsel %vm116_vm3, %v1179_v47, -inf }
0x18c4   :  { %v1190_v49 = vmax.f32 %v1188_v48, %v1189_v46 }
0x18c6   :  { %v1191_v50 = vrot.slane %v1190_v49, 4 }
0x18c8   :  { %v1192_v51 = vmax.f32 %v1190_v49, %v1191_v50 }
0x18ca   :  { %v1193_v23 = vrot.slane %v1192_v51, 2 }
0x18cc   :  { %v1194_v7 = vmax.f32 %v1192_v51, %v1193_v23 }
0x18ce   :  { %v1195_v24 = vrot.slane %v1194_v7, 1 }
0x18d0   :  { %v1196_v29 = vmax.f32 %v1194_v7, %v1195_v24 }
0x18d2   :  { %v1197_v30 = vsub.f32 %v1179_v47, %v1196_v29  ;;  %v1198_v31 = vsub.f32 %v1552_v45, %v1196_v29 }
0x18d4   :  { %v1199_v35 = vmul.f32 1.442695, %v1197_v30  ;;  %v1201_v36 = vmul.f32 1.442695, %v1198_v31 }
0x18d6   :  { %1736 = vpow2.f32 %v1199_v35 }
0x18d7   :  { %1738 = vpow2.f32 %v1201_v36 }
0x18e0   :  { %v1737_v52 = vpop.eup %1736 }
0x18e1   :  { %v1739_v39 = vpop.eup %1738  ;;  %v1276_v40 = vmul.f32 %v1737_v52, %v985_v4 }
0x18e2   :  { %v1587_v53 = vpack.c.bf16 %v1739_v39, %v1737_v52  ;;  %v1277_v54 = vmul.f32 %v1739_v39, %v988_v16 }
0x18e4   :  { %1588 = vmatpush3.bf16.msra.mxu0 %v1587_v53  ;;  %v1590_v22 = vpack.c.bf16 %v1277_v54, %v1276_v40 }
0x18e5   :  { %1592 = vmatprep.subr.bf16.mxu0 %v1773_v44 }
0x18e6   :  { %1591 = vmatpush3.bf16.msra.mxu1 %v1590_v22 }
0x18e7   :  { %1558 = vmatmul.mubr.msk.f32.vlgmr.msra.gmra.mrb[20].mxu0 %vm1203_vm9, %v2044_v5 }
0x18e8   :  { %1575 = vmatprep.mubr.msk.f32.mxu0 %vm1770_vm7, %v1769_v25  ;;  %1594 = vmatpush3.bf16.msra.mxu0 %v1593_v57  ;;  %v1353_v25 = vld [vmem:[%s2113_s5 + $0x18] sm:$0xff] }
0x18e9   :  { %1565 = vmatmul.mubr.msk.f32.vlgmr.msra.gmra.mrb[28].mxu1 %vm1203_vm9, %v2044_v5  ;;  %1595 = vmatprep.subr.bf16.mxu0 %v1773_v44  ;;  %v1596_v59 = vpack.c.bf16 %v1353_v25, %v1352_v58 }
0x18ec   :  { %1597 = vmatpush3.bf16.msra.mxu0 %v1596_v59 }
0x19ba   :  { %v1272_v60 = vpop.f32.mrb[20].mxu0 }
0x19bb   :  { %1740 = vrcp.f32 %v1272_v60  ;;  %v1559_v61 = vpop.f32.mrb[21].mxu0 }
0x19bc   :  { %v1344_v62 = vpop.f32.mrb[28].mxu1 }
0x19bd   :  { %v1566_v63 = vpop.f32.mrb[29].mxu1 }
0x19c5   :  { %v1741_v0 = vpop.eup %1740 }
0x19c6   :  { %v1349_v1 = vmul.f32 %v1741_v0, %v1344_v62 }
0x19c8   :  { %1576 = vmatmul.mubr.msk.f32.vlgmr.msra.gmra.mrb[22].mxu0 %vm116_vm3, %v1349_v1 }
0x1a9b   :  { %v1428_v3 = vpop.f32.mrb[22].mxu0 }
0x1a9c   :  { %v1429_v5 = vadd.f32 %v1498_v2, %v1428_v3  ;;  %v1577_v6 = vpop.f32.mrb[23].mxu0 }
0x1a9e   :  { %1433 = vst.msk [vmem:[#allocation2] sm:$0x3] %vm1432_vm10, %v1429_v5 }
0x1a9f   :  { %1753 = shalt.err (!%p1750_p4)
}
0x1aa0   :  { %s1754_s30 = scalar_lea.hbm %s2114_s6, 32 }
0x1aa1   :  { %p1755_p5 = scmp.ne.s32.totalorder %s2114_s6, %s1754_s30  ;;  %p1758_p6 = scmp.lt.u32.totalorder %s1754_s30, %s2114_s6 }
0x1aa3   :  { %p1760_p7 = pnand %p1758_p6, %p1755_p5 }
0x1aa5   :  { %1763 = shalt.err (!%p1760_p7)
}
0x1aa6   :  { %1443 = dma.vmem_to_hbm [thread:$0]  %s1441_s27, 32, %s2114_s6, [#allocation3]  }
0x1aa7   :  { %1764 = dma.done.wait [#allocation3], 32  }
0x1aa8   :  { %1765 = vsyncadd [#allocation3], 4294967264 }
0x1aa9   :  { %1447 = vsyncpa [#allocation3], 1 }

</bundles_post_ra>
